<compile_context>
chip_gen: v7x
topology: tpu7x:2x2x1
jax: 0.10.0
libtpu: 0.0.40
codegen_flags: <defaults>
</compile_context>

<pallas_src>
import math

import jax
import jax.numpy as jnp
from jax.experimental import pallas as pl
from jax.experimental.pallas import tpu as pltpu

_LANE = 128
_NEG_BIG = -1e30  # bias for padded logit columns -> zero softmax probability


def _round_up(x, m):
    return ((x + m - 1) // m) * m


def _default_tile_m():
    # 128-row tiles already saturate the v5e MXU; 256 matches v6e/v7x.
    try:
        kind = jax.devices()[0].device_kind.lower()
    except Exception:
        kind = ""
    return 128 if "v5" in kind else 256


def _mlp_kernel(x_ref, w1_ref, b1_ref, w2_ref, b2_ref, o_ref):
    # x_ref: (TM, Din) bf16, w1_ref: (Din, HidP) bf16, b1_ref: (1, HidP) f32,
    # w2_ref: (HidP, DoutP) bf16, b2_ref: (1, DoutP) f32, o_ref: (TM, DoutP) f32
    x = x_ref[...]

    # layer_input: x @ W1 + b1   (bf16 MXU inputs, f32 accumulate, f32 bias add)
    h = jnp.dot(x, w1_ref[...], preferred_element_type=jnp.float32) + b1_ref[...]

    # dropout: nn.Dropout() in eval mode is the identity.
    # TODO(synk): training-mode dropout (p=0.5 Bernoulli mask + 1/(1-p) scale) not implemented.

    # relu (f32 on the VPU)
    h = jnp.maximum(h, 0.0)

    # layer_hidden: h @ W2 + b2  (cast activation to bf16 for the MXU)
    logits = jnp.dot(h.astype(jnp.bfloat16), w2_ref[...],
                     preferred_element_type=jnp.float32) + b2_ref[...]

    # softmax over dim=1 (numerically stable; padded columns carry -1e30 bias
    # so exp() gives exactly 0 for them)
    m = jnp.max(logits, axis=1, keepdims=True)
    e = jnp.exp(logits - m)
    denom = jnp.sum(e, axis=1, keepdims=True)
    o_ref[...] = (e * pl.reciprocal(denom, approx=True)).astype(o_ref.dtype)


def mlp_forward(x_nchw, w1, b1, w2, b2, *, tile_m=None):
    """x_nchw: (B, C, H, W) float32. Returns softmax probs (B, Dout) float32."""
    B = x_nchw.shape[0]
    din = x_nchw.shape[1] * x_nchw.shape[-2] * x_nchw.shape[-1]
    x2d = x_nchw.reshape(B, din)  # row-major flatten == torch .view

    hid = w1.shape[1]
    dout = w2.shape[1]

    # Pad hidden / output feature dims to full 128-lane width:
    #  * lane-dense (unmasked) stores for the output tile
    #  * dense MXU columns in both matmuls
    hid_p = _round_up(max(hid, _LANE), _LANE)
    dout_p = _round_up(max(dout, _LANE), _LANE)

    w1_p = jnp.zeros((din, hid_p), jnp.float32).at[:, :hid].set(w1)
    b1_p = jnp.zeros((1, hid_p), jnp.float32).at[:, :hid].set(b1)
    w2_p = jnp.zeros((hid_p, dout_p), jnp.float32).at[:hid, :dout].set(w2)
    b2_p = jnp.full((1, dout_p), _NEG_BIG, jnp.float32).at[:, :dout].set(b2)

    # Batch tiling: TM rows per grid step, batch padded up to a whole tile.
    if tile_m is None:
        tile_m = _default_tile_m()
    tm = min(tile_m, _round_up(max(B, 8), 8))
    b_p = _round_up(B, tm)
    if b_p != B:
        x2d = jnp.zeros((b_p, din), x2d.dtype).at[:B].set(x2d)

    # bf16 inputs for the MXU (accumulation stays f32 inside the kernel).
    x_bf16 = x2d.astype(jnp.bfloat16)
    w1_bf16 = w1_p.astype(jnp.bfloat16)
    w2_bf16 = w2_p.astype(jnp.bfloat16)

    grid = (b_p // tm,)

    out_padded = pl.pallas_call(
        _mlp_kernel,
        out_shape=jax.ShapeDtypeStruct((b_p, dout_p), jnp.float32),
        grid=grid,
        in_specs=[
            # activations: tiled along the batch grid axis
            pl.BlockSpec((tm, din), lambda i: (i, 0)),
            # weights / biases: constant index_map -> DMA'd once, VMEM-resident
            pl.BlockSpec((din, hid_p), lambda i: (0, 0)),
            pl.BlockSpec((1, hid_p), lambda i: (0, 0)),
            pl.BlockSpec((hid_p, dout_p), lambda i: (0, 0)),
            pl.BlockSpec((1, dout_p), lambda i: (0, 0)),
        ],
        out_specs=pl.BlockSpec((tm, dout_p), lambda i: (i, 0)),
        compiler_params=pltpu.CompilerParams(
            dimension_semantics=("parallel",),      # megacore sharding on v7x
            vmem_limit_bytes=32 * 1024 * 1024,      # fits v7x's 64 MiB VMEM
        ),
    )(x_bf16, w1_bf16, b1_p, w2_bf16, b2_p)

    # Strip batch padding and padded logit columns.
    return out_padded[:B, :dout]


def init_params(key, dim_in, dim_hidden, dim_out):
    """Deterministic init mimicking nn.Linear's U(-1/sqrt(fan_in), +1/sqrt(fan_in))."""
    k1, k2, k3, k4 = jax.random.split(key, 4)
    bound1 = 1.0 / math.sqrt(dim_in)
    bound2 = 1.0 / math.sqrt(dim_hidden)
    w1 = jax.random.uniform(k1, (dim_in, dim_hidden), jnp.float32, -bound1, bound1)
    b1 = jax.random.uniform(k2, (1, dim_hidden), jnp.float32, -bound1, bound1)
    w2 = jax.random.uniform(k3, (dim_hidden, dim_out), jnp.float32, -bound2, bound2)
    b2 = jax.random.uniform(k4, (1, dim_out), jnp.float32, -bound2, bound2)
    return w1, b1, w2, b2


if __name__ == "__main__":
    key = jax.random.PRNGKey(0)
    kx, kp = jax.random.split(key)

    # Small shapes consistent with the module's forward: NCHW image input.
    B, C, H, W = 2, 4, 16, 16
    dim_in = C * H * W          # 1024
    dim_hidden = 32             # fixed in MLP.__init__
    dim_out = 10

    x = jax.random.normal(kx, (B, C, H, W), jnp.float32)
    w1, b1, w2, b2 = init_params(kp, dim_in, dim_hidden, dim_out)

    out = mlp_forward(x, w1, b1, w2, b2)
    out = jax.block_until_ready(out)

    # quick sanity: shape and softmax rows sum to ~1 (approx reciprocal -> ~1e-4)
    assert out.shape == (B, dim_out)
    assert jnp.allclose(jnp.sum(out, axis=1), 1.0, atol=2e-3)

    x2d = x.reshape(B, dim_in)

    # Reference matching the kernel's numerics (bf16 MXU inputs, f32 accumulate).
    xb = x2d.astype(jnp.bfloat16)
    w1b = w1.astype(jnp.bfloat16)
    w2b = w2.astype(jnp.bfloat16)
    h_ref = jnp.maximum(jnp.dot(xb, w1b, preferred_element_type=jnp.float32) + b1, 0.0)
    logits_ref = jnp.dot(h_ref.astype(jnp.bfloat16), w2b,
                         preferred_element_type=jnp.float32) + b2
    ref_bf16 = jax.nn.softmax(logits_ref, axis=1)
    assert jnp.allclose(out, ref_bf16, atol=5e-3)

    # Pure-f32 PyTorch-equivalent reference (looser tolerance: bf16 matmul inputs).
    ref_f32 = jax.nn.softmax(jnp.maximum(x2d @ w1 + b1, 0.0) @ w2 + b2, axis=1)
    assert jnp.allclose(out, ref_f32, atol=3e-2)

    print("KERNEL_OK")
</pallas_src>

<mosaic_0001>
module attributes {stable_mosaic.version = 11 : i64} {
  func.func @_mlp_kernel(%arg0: i32, %arg1: memref<8x1024xbf16, #tpu.memory_space<vmem>>, %arg2: memref<1024x128xbf16, #tpu.memory_space<vmem>>, %arg3: memref<1x128xf32, #tpu.memory_space<vmem>>, %arg4: memref<128x128xbf16, #tpu.memory_space<vmem>>, %arg5: memref<1x128xf32, #tpu.memory_space<vmem>>, %arg6: memref<8x128xf32, #tpu.memory_space<vmem>>) attributes {dimension_semantics = [#tpu.dimension_semantics<parallel>], iteration_bounds = array<i64: 1>, scalar_prefetch = 0 : i64, scratch_operands = 0 : i64, tpu.core_type = #tpu.core_type<tc>, window_params = [{transform_indices = @transform_0, window_bounds = array<i64: 8, 1024>}, {pipeline_mode = #tpu.pipeline_mode<synchronous>, transform_indices = @transform_1, window_bounds = array<i64: 1024, 128>}, {pipeline_mode = #tpu.pipeline_mode<synchronous>, transform_indices = @transform_2, window_bounds = array<i64: 1, 128>}, {pipeline_mode = #tpu.pipeline_mode<synchronous>, transform_indices = @transform_3, window_bounds = array<i64: 128, 128>}, {pipeline_mode = #tpu.pipeline_mode<synchronous>, transform_indices = @transform_4, window_bounds = array<i64: 1, 128>}, {transform_indices = @transform_5, window_bounds = array<i64: 8, 128>}]} {
    %c0 = arith.constant 0 : index
    %c0_0 = arith.constant 0 : index
    %0 = vector.load %arg1[%c0, %c0_0] : memref<8x1024xbf16, #tpu.memory_space<vmem>>, vector<8x1024xbf16>
    %c0_1 = arith.constant 0 : index
    %c0_2 = arith.constant 0 : index
    %1 = vector.load %arg2[%c0_1, %c0_2] : memref<1024x128xbf16, #tpu.memory_space<vmem>>, vector<1024x128xbf16>
    %cst = arith.constant dense<0.000000e+00> : vector<8x128xf32>
    %2 = tpu.matmul %0, %1, %cst {dimension_numbers = #tpu.dot_dimension_numbers<[1], [0], [0], [1], [0, 0, 1, 1], [], []>} : vector<8x1024xbf16>, vector<1024x128xbf16>, vector<8x128xf32> -> vector<8x128xf32>
    %c0_3 = arith.constant 0 : index
    %c0_4 = arith.constant 0 : index
    %3 = vector.load %arg3[%c0_3, %c0_4] : memref<1x128xf32, #tpu.memory_space<vmem>>, vector<1x128xf32>
    %4 = vector.broadcast %3 : vector<1x128xf32> to vector<8x128xf32>
    %5 = arith.addf %2, %4 : vector<8x128xf32>
    %cst_5 = arith.constant 0.000000e+00 : f32
    %6 = vector.broadcast %cst_5 : f32 to vector<8x128xf32>
    %7 = arith.maximumf %5, %6 : vector<8x128xf32>
    %8 = arith.truncf %7 : vector<8x128xf32> to vector<8x128xbf16>
    %c0_6 = arith.constant 0 : index
    %c0_7 = arith.constant 0 : index
    %9 = vector.load %arg4[%c0_6, %c0_7] : memref<128x128xbf16, #tpu.memory_space<vmem>>, vector<128x128xbf16>
    %cst_8 = arith.constant dense<0.000000e+00> : vector<8x128xf32>
    %10 = tpu.matmul %8, %9, %cst_8 {dimension_numbers = #tpu.dot_dimension_numbers<[1], [0], [0], [1], [0, 0, 1, 1], [], []>} : vector<8x128xbf16>, vector<128x128xbf16>, vector<8x128xf32> -> vector<8x128xf32>
    %c0_9 = arith.constant 0 : index
    %c0_10 = arith.constant 0 : index
    %11 = vector.load %arg5[%c0_9, %c0_10] : memref<1x128xf32, #tpu.memory_space<vmem>>, vector<1x128xf32>
    %12 = vector.broadcast %11 : vector<1x128xf32> to vector<8x128xf32>
    %13 = arith.addf %10, %12 : vector<8x128xf32>
    %cst_11 = arith.constant dense<0xFF800000> : vector<8xf32>
    %14 = vector.multi_reduction <maximumf>, %13, %cst_11 [1] : vector<8x128xf32> to vector<8xf32>
    %15 = vector.shape_cast %14 : vector<8xf32> to vector<8x1xf32>
    %16 = vector.broadcast %15 : vector<8x1xf32> to vector<8x128xf32>
    %17 = arith.subf %13, %16 : vector<8x128xf32>
    %18 = math.exp %17 : vector<8x128xf32>
    %cst_12 = arith.constant dense<0.000000e+00> : vector<8xf32>
    %19 = vector.multi_reduction <add>, %18, %cst_12 [1] : vector<8x128xf32> to vector<8xf32>
    %20 = vector.shape_cast %19 : vector<8xf32> to vector<8x1xf32>
    %21 = tpu.reciprocal %20 {approx = true} : vector<8x1xf32> -> vector<8x1xf32>
    %22 = vector.broadcast %21 : vector<8x1xf32> to vector<8x128xf32>
    %23 = arith.mulf %18, %22 : vector<8x128xf32>
    %c0_13 = arith.constant 0 : index
    %c0_14 = arith.constant 0 : index
    %24 = vector.load %arg6[%c0_13, %c0_14] : memref<8x128xf32, #tpu.memory_space<vmem>>, vector<8x128xf32>
    tpu.vector_store %arg6[%c0_13, %c0_14], %23 {strides = array<i32>} : memref<8x128xf32, #tpu.memory_space<vmem>>, vector<8x128xf32>,
    return
  }
  func.func @transform_0(%arg0: i32) -> (i32, i32) {
    %c0_i32 = arith.constant 0 : i32
    %c0_i32_0 = arith.constant 0 : i32
    return %arg0, %c0_i32 : i32, i32
  }
  func.func @transform_1(%arg0: i32) -> (i32, i32) {
    %c0_i32 = arith.constant 0 : i32
    %c0_i32_0 = arith.constant 0 : i32
    %c0_i32_1 = arith.constant 0 : i32
    return %c0_i32, %c0_i32_0 : i32, i32
  }
  func.func @transform_2(%arg0: i32) -> (i32, i32) {
    %c0_i32 = arith.constant 0 : i32
    %c0_i32_0 = arith.constant 0 : i32
    %c0_i32_1 = arith.constant 0 : i32
    return %c0_i32, %c0_i32_0 : i32, i32
  }
  func.func @transform_3(%arg0: i32) -> (i32, i32) {
    %c0_i32 = arith.constant 0 : i32
    %c0_i32_0 = arith.constant 0 : i32
    %c0_i32_1 = arith.constant 0 : i32
    return %c0_i32, %c0_i32_0 : i32, i32
  }
  func.func @transform_4(%arg0: i32) -> (i32, i32) {
    %c0_i32 = arith.constant 0 : i32
    %c0_i32_0 = arith.constant 0 : i32
    %c0_i32_1 = arith.constant 0 : i32
    return %c0_i32, %c0_i32_0 : i32, i32
  }
  func.func @transform_5(%arg0: i32) -> (i32, i32) {
    %c0_i32 = arith.constant 0 : i32
    %c0_i32_0 = arith.constant 0 : i32
    return %arg0, %c0_i32 : i32, i32
  }
}

</mosaic_0001>

<bundles_post_ra>
// kernel: tpu_custom_call.1
= control target key start
LH: loop header
LB: loop body
LE: loop exit
PB: predicated region body
PF: predicated region fallthrough
CT: control target
= control target key end

     0   :  { %10 = vsyncpa [#allocation3], 0  ;;  %s1394_s0 = inlined_call_operand.hbm [shape: bf16[8,1024], index: 0, kind: input, shape index: {}]   ;;  %s1395_s1 = inlined_call_operand.hbm [shape: bf16[1024,128], index: 1, kind: input, shape index: {}]   ;;  %s1396_s2 = inlined_call_operand.vmem [shape: f32[1,128], index: 2, kind: input, shape index: {}]   ;;  %s1397_s3 = inlined_call_operand.hbm [shape: bf16[128,128], index: 3, kind: input, shape index: {}]   ;;  %s1398_s4 = inlined_call_operand.vmem [shape: f32[1,128], index: 4, kind: input, shape index: {}]   ;;  %s1399_s5 = inlined_call_operand.hbm [shape: f32[8,128], index: 5, kind: output, shape index: {}]  }
   0x1   :  { %11 = vsyncpa [#allocation6], 0 }
   0x2   :  { %12 = vsyncpa [#allocation4], 0  ;;  %s1296_s18 = smov [#allocation5]   ;;  %s1202_s22 = scalar_lea.hbm %s1395_s1, 8192 }
   0x3   :  { %s28_s19 = sshll.u32 %s1296_s18, 4  ;;  %p1203_p0 = scmp.ne.s32.totalorder %s1395_s1, %s1202_s22  ;;  %s29_s19 = int_to_ptr.vmem [resolvable:$true] %s28_s19 }
   0x4   :  { %p1206_p1 = scmp.lt.u32.totalorder %s1202_s22, %s1395_s1 }
   0x6   :  { %p1208_p2 = pnand %p1206_p1, %p1203_p0 }
   0x8   :  { %1211 = shalt.err (!%p1208_p2)
}
   0x9   :  { %s1212_s27 = scalar_lea.vmem %s29_s19, 8192  ;;  %p1217_p4 = scmp.lt.s32.totalorder %s29_s19, %s29_s19 }
   0xa   :  { %p1213_p3 = scmp.ne.s32.totalorder %s29_s19, %s1212_s27  ;;  %p1218_p5 = scmp.lt.s32.totalorder %s1212_s27, %s1212_s27 }
   0xc   :  { %p1219_p6 = por %p1218_p5, %p1217_p4 }
   0xe   :  { %p1220_p7 = pnand %p1219_p6, %p1213_p3 }
  0x10   :  { %1223 = shalt.err (!%p1220_p7)
}
  0x11   :  { %s1297_s28 = smov 64   ;;  %s1298_s29 = smov 4  }
  0x12   :  { %34 = dma.hbm_to_vmem [thread:$0]  %s1395_s1, 8192, %s29_s19, [#allocation6], %s1297_s28, %s1297_s28, %s1298_s29  }
  0x13   :  { %s1299_s7 = smov [#allocation2]   ;;  %s1300_s9 = smov [#allocation7]  }
  0x14   :  { %s19_s8 = sshll.u32 %s1299_s7, 4  ;;  %s42_s10 = sshll.u32 %s1300_s9, 4  ;;  %s20_s8 = int_to_ptr.vmem [resolvable:$true] %s19_s8  ;;  %s43_s10 = int_to_ptr.vmem [resolvable:$true] %s42_s10 }
  0x15   :  { %s1224_s13 = scalar_lea.hbm %s1394_s0, 512 }
  0x16   :  { %p1225_p8 = scmp.ne.s32.totalorder %s1394_s0, %s1224_s13  ;;  %p1228_p9 = scmp.lt.u32.totalorder %s1224_s13, %s1394_s0 }
  0x18   :  { %p1230_p10 = pnand %p1228_p9, %p1225_p8 }
  0x1a   :  { %1233 = shalt.err (!%p1230_p10)
}
  0x1b   :  { %s1234_s1 = scalar_lea.vmem %s20_s8, 512  ;;  %p1239_p12 = scmp.lt.s32.totalorder %s20_s8, %s20_s8 }
  0x1c   :  { %p1235_p11 = scmp.ne.s32.totalorder %s20_s8, %s1234_s1  ;;  %p1240_p13 = scmp.lt.s32.totalorder %s1234_s1, %s1234_s1 }
  0x1e   :  { %p1241_p0 = por %p1240_p13, %p1239_p12 }
  0x20   :  { %p1242_p1 = pnand %p1241_p0, %p1235_p11 }
  0x22   :  { %1245 = shalt.err (!%p1242_p1)
}
  0x23   :  { %22 = dma.hbm_to_vmem [thread:$0]  %s1394_s0, 512, %s20_s8, [#allocation3]  }
  0x24   :  { %s1246_s22 = scalar_lea.hbm %s1397_s3, 1024 }
  0x25   :  { %p1247_p2 = scmp.ne.s32.totalorder %s1397_s3, %s1246_s22  ;;  %p1250_p3 = scmp.lt.u32.totalorder %s1246_s22, %s1397_s3 }
  0x27   :  { %p1252_p4 = pnand %p1250_p3, %p1247_p2 }
  0x29   :  { %1255 = shalt.err (!%p1252_p4)
}
  0x2a   :  { %s1256_s27 = scalar_lea.vmem %s43_s10, 1024  ;;  %p1261_p6 = scmp.lt.s32.totalorder %s43_s10, %s43_s10 }
  0x2b   :  { %p1257_p5 = scmp.ne.s32.totalorder %s43_s10, %s1256_s27  ;;  %p1262_p7 = scmp.lt.s32.totalorder %s1256_s27, %s1256_s27 }
  0x2d   :  { %p1263_p8 = por %p1262_p7, %p1261_p6 }
  0x2f   :  { %p1264_p9 = pnand %p1263_p8, %p1257_p5 }
  0x31   :  { %1267 = shalt.err (!%p1264_p9)
}
  0x32   :  { %48 = dma.hbm_to_vmem [thread:$0]  %s1397_s3, 1024, %s43_s10, [#allocation6], %s1297_s28, %s1297_s28, %s1298_s29  }
  0x33   :  { %1290 = dma.done.wait [#allocation3], 512  }
  0x34   :  { %1291 = vsyncadd [#allocation3], 4294966784 }
  0x35   :  { %1292 = dma.done.wait [#allocation6], 9216  }
  0x36   :  { %1293 = vsyncadd [#allocation6], 4294958080  ;;  %v1118_v0 = vld [vmem:[#allocation5 + $0x40] sm:$0xff]   ;;  %v1122_v4 = vld [vmem:[#allocation5 + $0x48] sm:$0xff]   ;;  %vm1302_vm0 = vmmov 0   ;;  %s1303_s6 = smov [#allocation8]  }
  0x37   :  { %v1119_v1 = vld [vmem:[#allocation5 + $0xc0] sm:$0xff]   ;;  %993 = vmatprep.subr.bf16.mxu0 %v1118_v0  ;;  %v1123_v5 = vld [vmem:[#allocation5 + $0xc8] sm:$0xff]   ;;  %v1126_v8 = vld [vmem:[#allocation5 + $0x50] sm:$0xff]   ;;  %s901_s7 = sshll.u32 %s1303_s6, 4  ;;  %s902_s7 = int_to_ptr.vmem [resolvable:$true] %s901_s7 }
  0x38   :  { %v1120_v2 = vld [vmem:[#allocation5] sm:$0xff]   ;;  %1015 = vmatprep.subr.bf16.mxu1 %v1119_v1  ;;  %v1124_v6 = vld [vmem:[#allocation5 + $0x8] sm:$0xff]   ;;  %v1127_v9 = vld [vmem:[#allocation5 + $0xd0] sm:$0xff]   ;;  %p1273_p11 = scmp.lt.s32.totalorder %s902_s7, %s902_s7 }
  0x39   :  { %v1121_v3 = vld [vmem:[#allocation5 + $0x80] sm:$0xff]   ;;  %994 = vmatpush3.bf16.msra.mxu0 %v1120_v2  ;;  %v1125_v7 = vld [vmem:[#allocation5 + $0x88] sm:$0xff]   ;;  %v1128_v10 = vld [vmem:[#allocation5 + $0x10] sm:$0xff]  }
  0x3a   :  { %1016 = vmatpush3.bf16.msra.mxu1 %v1121_v3  ;;  %995 = vmatprep.subr.bf16.mxu0 %v1122_v4  ;;  %v1129_v11 = vld [vmem:[#allocation5 + $0x90] sm:$0xff]   ;;  %v1130_v12 = vld [vmem:[#allocation5 + $0x58] sm:$0xff]   ;;  %v1134_v16 = vld [vmem:[#allocation5 + $0x60] sm:$0xff]  }
  0x3b   :  { %1017 = vmatprep.subr.bf16.mxu1 %v1123_v5  ;;  %v1131_v13 = vld [vmem:[#allocation5 + $0xd8] sm:$0xff]   ;;  %v1135_v17 = vld [vmem:[#allocation5 + $0xe0] sm:$0xff]   ;;  %v1138_v20 = vld [vmem:[#allocation5 + $0x68] sm:$0xff]  }
  0x3c   :  { %v1132_v14 = vld [vmem:[#allocation5 + $0x18] sm:$0xff]   ;;  %v1136_v18 = vld [vmem:[#allocation5 + $0x20] sm:$0xff]   ;;  %v1139_v21 = vld [vmem:[#allocation5 + $0xe8] sm:$0xff]  }
  0x3d   :  { %996 = vmatpush3.bf16.msra.mxu0 %v1124_v6  ;;  %v1133_v15 = vld [vmem:[#allocation5 + $0x98] sm:$0xff]   ;;  %v1137_v19 = vld [vmem:[#allocation5 + $0xa0] sm:$0xff]   ;;  %v1140_v22 = vld [vmem:[#allocation5 + $0x28] sm:$0xff]  }
  0x3e   :  { %1018 = vmatpush3.bf16.msra.mxu1 %v1125_v7  ;;  %997 = vmatprep.subr.bf16.mxu0 %v1126_v8  ;;  %v1141_v23 = vld [vmem:[#allocation5 + $0xa8] sm:$0xff]   ;;  %v1142_v24 = vld [vmem:[#allocation5 + $0x70] sm:$0xff]   ;;  %v1146_v28 = vld [vmem:[#allocation5 + $0x78] sm:$0xff]  }
  0x3f   :  { %1019 = vmatprep.subr.bf16.mxu1 %v1127_v9  ;;  %v1143_v25 = vld [vmem:[#allocation5 + $0xf0] sm:$0xff]   ;;  %v1147_v29 = vld [vmem:[#allocation5 + $0xf8] sm:$0xff]   ;;  %v61_v32 = vld [vmem:[#allocation2] sm:$0xff] }
  0x40   :  { %v1144_v26 = vld [vmem:[#allocation5 + $0x30] sm:$0xff]   ;;  %v1148_v30 = vld [vmem:[#allocation5 + $0x38] sm:$0xff]   ;;  %v62_v33 = vld [vmem:[#allocation2 + $0x8] sm:$0xff]  ;;  %v912_v34 = vcombine.low %v61_v32, %v61_v32  ;;  %v913_v35 = vcombine.high %v61_v32, %v61_v32 }
  0x41   :  { %998 = vmatpush3.bf16.msra.mxu0 %v1128_v10  ;;  %v1145_v27 = vld [vmem:[#allocation5 + $0xb0] sm:$0xff]   ;;  %v1149_v31 = vld [vmem:[#allocation5 + $0xb8] sm:$0xff]   ;;  %v914_v36 = vcombine.low %v62_v33, %v62_v33  ;;  %v915_v37 = vcombine.high %v62_v33, %v62_v33  ;;  %v1154_v38 = vld [vmem:[#allocation5 + $0x140] sm:$0xff]  }
  0x42   :  { %1020 = vmatpush3.bf16.msra.mxu1 %v1129_v11  ;;  %999 = vmatprep.subr.bf16.mxu0 %v1130_v12  ;;  %v1155_v39 = vld [vmem:[#allocation5 + $0x1c0] sm:$0xff]   ;;  %v1158_v42 = vld [vmem:[#allocation5 + $0x148] sm:$0xff]   ;;  %v1162_v46 = vld [vmem:[#allocation5 + $0x150] sm:$0xff]  }
  0x43   :  { %1021 = vmatprep.subr.bf16.mxu1 %v1131_v13  ;;  %644 = vmatprep.mubr.bf16.mxu0 %v913_v35  ;;  %v1156_v40 = vld [vmem:[#allocation5 + $0x100] sm:$0xff]   ;;  %v1159_v43 = vld [vmem:[#allocation5 + $0x1c8] sm:$0xff]   ;;  %v1163_v47 = vld [vmem:[#allocation5 + $0x1d0] sm:$0xff]   ;;  %v1301_v13 = vmov 0.0  }
  0x44   :  { %684 = vmatprep.mubr.bf16.mxu1 %v915_v37  ;;  %v1157_v41 = vld [vmem:[#allocation5 + $0x180] sm:$0xff]   ;;  %v1160_v44 = vld [vmem:[#allocation5 + $0x108] sm:$0xff]   ;;  %v1164_v48 = vld [vmem:[#allocation5 + $0x110] sm:$0xff]  }
  0x45   :  { %1000 = vmatpush3.bf16.msra.mxu0 %v1132_v14  ;;  %v1161_v45 = vld [vmem:[#allocation5 + $0x188] sm:$0xff]   ;;  %v1165_v49 = vld [vmem:[#allocation5 + $0x190] sm:$0xff]   ;;  %v1166_v50 = vld [vmem:[#allocation5 + $0x158] sm:$0xff]  }
  0x46   :  { %1022 = vmatpush3.bf16.msra.mxu1 %v1133_v15  ;;  %1001 = vmatprep.subr.bf16.mxu0 %v1134_v16  ;;  %v1167_v51 = vld [vmem:[#allocation5 + $0x1d8] sm:$0xff]   ;;  %v1170_v54 = vld [vmem:[#allocation5 + $0x160] sm:$0xff]   ;;  %v1174_v58 = vld [vmem:[#allocation5 + $0x168] sm:$0xff]  }
  0x47   :  { %1023 = vmatprep.subr.bf16.mxu1 %v1135_v17  ;;  %v1168_v52 = vld [vmem:[#allocation5 + $0x118] sm:$0xff]   ;;  %v1171_v55 = vld [vmem:[#allocation5 + $0x1e0] sm:$0xff]   ;;  %v1175_v59 = vld [vmem:[#allocation5 + $0x1e8] sm:$0xff]  }
  0x48   :  { %v1169_v53 = vld [vmem:[#allocation5 + $0x198] sm:$0xff]   ;;  %v1172_v56 = vld [vmem:[#allocation5 + $0x120] sm:$0xff]   ;;  %v1176_v60 = vld [vmem:[#allocation5 + $0x128] sm:$0xff]  }
  0x49   :  { %1002 = vmatpush3.bf16.msra.mxu0 %v1136_v18  ;;  %v1173_v57 = vld [vmem:[#allocation5 + $0x1a0] sm:$0xff]   ;;  %v1177_v61 = vld [vmem:[#allocation5 + $0x1a8] sm:$0xff]   ;;  %v1178_v62 = vld [vmem:[#allocation5 + $0x170] sm:$0xff]  }
  0x4a   :  { %1024 = vmatpush3.bf16.msra.mxu1 %v1137_v19  ;;  %1003 = vmatprep.subr.bf16.mxu0 %v1138_v20  ;;  %v1179_v63 = vld [vmem:[#allocation5 + $0x1f0] sm:$0xff]   ;;  %v1182_v2 = vld [vmem:[#allocation5 + $0x178] sm:$0xff]   ;;  %v1190_v12 = vld [vmem:[#allocation7] sm:$0xff]  }
  0x4b   :  { %1025 = vmatprep.subr.bf16.mxu1 %v1139_v21  ;;  %v1180_v0 = vld [vmem:[#allocation5 + $0x130] sm:$0xff]   ;;  %v1183_v3 = vld [vmem:[#allocation5 + $0x1f8] sm:$0xff]   ;;  %v1191_v14 = vld [vmem:[#allocation7 + $0x8] sm:$0xff]  }
  0x4c   :  { %v1181_v1 = vld [vmem:[#allocation5 + $0x1b0] sm:$0xff]   ;;  %v1184_v4 = vld [vmem:[#allocation5 + $0x138] sm:$0xff]   ;;  %v1194_v17 = vld [vmem:[#allocation7 + $0x20] sm:$0xff]  }
  0x4d   :  { %1004 = vmatpush3.bf16.msra.mxu0 %v1140_v22  ;;  %v1185_v5 = vld [vmem:[#allocation5 + $0x1b8] sm:$0xff]   ;;  %v63_v6 = vld [vmem:[#allocation2 + $0x10] sm:$0xff]  ;;  %v1195_v18 = vld [vmem:[#allocation7 + $0x28] sm:$0xff]  }
  0x4e   :  { %1026 = vmatpush3.bf16.msra.mxu1 %v1141_v23  ;;  %1005 = vmatprep.subr.bf16.mxu0 %v1142_v24  ;;  %v916_v7 = vcombine.low %v63_v6, %v63_v6  ;;  %v917_v8 = vcombine.high %v63_v6, %v63_v6  ;;  %v64_v9 = vld [vmem:[#allocation2 + $0x18] sm:$0xff]  ;;  %v1192_v15 = vld [vmem:[#allocation7 + $0x10] sm:$0xff]   ;;  %v911_v23 = vld [vmem:[%s1396_s2] ss:$0 sm:$0xff] }
  0x4f   :  { %1027 = vmatprep.subr.bf16.mxu1 %v1143_v25  ;;  %v918_v10 = vcombine.low %v64_v9, %v64_v9  ;;  %v919_v11 = vcombine.high %v64_v9, %v64_v9  ;;  %v1193_v16 = vld [vmem:[#allocation7 + $0x18] sm:$0xff]   ;;  %v1196_v19 = vld [vmem:[#allocation7 + $0x30] sm:$0xff]  }
  0x50   :  { %v1197_v20 = vld [vmem:[#allocation7 + $0x38] sm:$0xff]  }
  0x51   :  { %1006 = vmatpush3.bf16.msra.mxu0 %v1144_v26 }
  0x52   :  { %1028 = vmatpush3.bf16.msra.mxu1 %v1145_v27  ;;  %1007 = vmatprep.subr.bf16.mxu0 %v1146_v28 }
  0x53   :  { %1029 = vmatprep.subr.bf16.mxu1 %v1147_v29 }
  0x55   :  { %1008 = vmatpush3.bf16.msra.mxu0 %v1148_v30 }
  0x56   :  { %1030 = vmatpush3.bf16.msra.mxu1 %v1149_v31  ;;  %1037 = vmatprep.subr.bf16.mxu0 %v1154_v38 }
  0x57   :  { %1059 = vmatprep.subr.bf16.mxu1 %v1155_v39 }
  0x58   :  { %645 = vmatmul.mubr.bf16.vlgmr.msra.gmra.mrb[0].mxu0 %v912_v34 }
  0x59   :  { %685 = vmatmul.mubr.bf16.vlgmr.msra.gmra.mrb[0].mxu1 %v914_v36  ;;  %1038 = vmatpush3.bf16.msra.mxu0 %v1156_v40 }
  0x5a   :  { %1060 = vmatpush3.bf16.msra.mxu1 %v1157_v41  ;;  %1039 = vmatprep.subr.bf16.mxu0 %v1158_v42 }
  0x5b   :  { %1061 = vmatprep.subr.bf16.mxu1 %v1159_v43  ;;  %724 = vmatprep.mubr.bf16.mxu0 %v917_v8 }
  0x5c   :  { %764 = vmatprep.mubr.bf16.mxu1 %v919_v11 }
  0x5d   :  { %1040 = vmatpush3.bf16.msra.mxu0 %v1160_v44 }
  0x5e   :  { %1062 = vmatpush3.bf16.msra.mxu1 %v1161_v45  ;;  %1041 = vmatprep.subr.bf16.mxu0 %v1162_v46 }
  0x5f   :  { %1063 = vmatprep.subr.bf16.mxu1 %v1163_v47 }
  0x61   :  { %1042 = vmatpush3.bf16.msra.mxu0 %v1164_v48  ;;  %v984_v48 = vld [vmem:[%s1398_s4] ss:$0 sm:$0xff]  ;;  %s1268_s4 = scalar_lea.vmem %s902_s7, 128 }
  0x62   :  { %1064 = vmatpush3.bf16.msra.mxu1 %v1165_v49  ;;  %1043 = vmatprep.subr.bf16.mxu0 %v1166_v50  ;;  %p1269_p10 = scmp.ne.s32.totalorder %s902_s7, %s1268_s4  ;;  %p1274_p12 = scmp.lt.s32.totalorder %s1268_s4, %s1268_s4 }
  0x63   :  { %1065 = vmatprep.subr.bf16.mxu1 %v1167_v51 }
  0x64   :  { %p1275_p13 = por %p1274_p12, %p1273_p11 }
  0x65   :  { %1044 = vmatpush3.bf16.msra.mxu0 %v1168_v52 }
  0x66   :  { %1066 = vmatpush3.bf16.msra.mxu1 %v1169_v53  ;;  %1045 = vmatprep.subr.bf16.mxu0 %v1170_v54  ;;  %p1276_p0 = pnand %p1275_p13, %p1269_p10 }
  0x67   :  { %1067 = vmatprep.subr.bf16.mxu1 %v1171_v55 }
  0x69   :  { %1046 = vmatpush3.bf16.msra.mxu0 %v1172_v56 }
  0x6a   :  { %1068 = vmatpush3.bf16.msra.mxu1 %v1173_v57  ;;  %1047 = vmatprep.subr.bf16.mxu0 %v1174_v58 }
  0x6b   :  { %1069 = vmatprep.subr.bf16.mxu1 %v1175_v59 }
  0x6d   :  { %1048 = vmatpush3.bf16.msra.mxu0 %v1176_v60 }
  0x6e   :  { %1070 = vmatpush3.bf16.msra.mxu1 %v1177_v61  ;;  %1049 = vmatprep.subr.bf16.mxu0 %v1178_v62 }
  0x6f   :  { %1071 = vmatprep.subr.bf16.mxu1 %v1179_v63 }
  0x71   :  { %1050 = vmatpush3.bf16.msra.mxu0 %v1180_v0 }
  0x72   :  { %1072 = vmatpush3.bf16.msra.mxu1 %v1181_v1  ;;  %1051 = vmatprep.subr.bf16.mxu0 %v1182_v2 }
  0x73   :  { %1073 = vmatprep.subr.bf16.mxu1 %v1183_v3 }
  0x75   :  { %1052 = vmatpush3.bf16.msra.mxu0 %v1184_v4 }
  0x76   :  { %1074 = vmatpush3.bf16.msra.mxu1 %v1185_v5  ;;  %1090 = vmatprep.subr.bf16.mxu0 %v1301_v13 }
  0x78   :  { %725 = vmatmul.mubr.bf16.vlgmr.msra.gmra.mrb[4].mxu0 %v916_v7 }
  0x79   :  { %765 = vmatmul.mubr.bf16.vlgmr.msra.gmra.mrb[4].mxu1 %v918_v10  ;;  %1091 = vmatpush3.bf16.msra.mxu0 %v1190_v12 }
  0x7a   :  { %1092 = vmatprep.subr.bf16.mxu0 %v1301_v13  ;;  %1106 = vmatprep.mubr.msk.bf16.mxu0 %vm1302_vm0, %v1301_v13 }
  0x7d   :  { %1093 = vmatpush3.bf16.msra.mxu0 %v1191_v14 }
  0x7e   :  { %1094 = vmatprep.subr.bf16.mxu0 %v1301_v13 }
  0x81   :  { %1095 = vmatpush3.bf16.msra.mxu0 %v1192_v15 }
  0x82   :  { %1096 = vmatprep.subr.bf16.mxu0 %v1301_v13 }
  0x85   :  { %1097 = vmatpush3.bf16.msra.mxu0 %v1193_v16 }
  0x86   :  { %1098 = vmatprep.subr.bf16.mxu0 %v1301_v13 }
  0x89   :  { %1099 = vmatpush3.bf16.msra.mxu0 %v1194_v17 }
  0x8a   :  { %1100 = vmatprep.subr.bf16.mxu0 %v1301_v13 }
  0x8d   :  { %1101 = vmatpush3.bf16.msra.mxu0 %v1195_v18 }
  0x8e   :  { %1102 = vmatprep.subr.bf16.mxu0 %v1301_v13 }
  0x91   :  { %1103 = vmatpush3.bf16.msra.mxu0 %v1196_v19 }
  0x92   :  { %1104 = vmatprep.subr.bf16.mxu0 %v1301_v13 }
  0x95   :  { %1105 = vmatpush3.bf16.msra.mxu0 %v1197_v20 }
 0x12b   :  { %v1009_v21 = vpop.f32.mrb[0].mxu0 }
 0x12c   :  { %v1031_v22 = vpop.f32.mrb[0].mxu1  ;;  %v1010_v24 = vpop.f32.mrb[1].mxu0 }
 0x12d   :  { %v1032_v25 = vpop.f32.mrb[1].mxu1  ;;  %v1011_v26 = vadd.f32 %v1010_v24, %v1009_v21  ;;  %v1012_v28 = vpop.f32.mrb[2].mxu0 }
 0x12e   :  { %v1033_v27 = vadd.f32 %v1032_v25, %v1031_v22  ;;  %v1034_v29 = vpop.f32.mrb[2].mxu1  ;;  %v1013_v30 = vpop.f32.mrb[3].mxu0 }
 0x12f   :  { %v1035_v31 = vpop.f32.mrb[3].mxu1  ;;  %v647_v32 = vadd.f32 %v1011_v26, %v911_v23 }
 0x131   :  { %v687_v33 = vadd.f32 %v1033_v27, %v647_v32 }
 0x14b   :  { %v1053_v34 = vpop.f32.mrb[4].mxu0 }
 0x14c   :  { %v1075_v35 = vpop.f32.mrb[4].mxu1  ;;  %v1054_v36 = vpop.f32.mrb[5].mxu0 }
 0x14d   :  { %v1076_v37 = vpop.f32.mrb[5].mxu1  ;;  %v1055_v38 = vadd.f32 %v1054_v36, %v1053_v34  ;;  %v1056_v40 = vpop.f32.mrb[6].mxu0 }
 0x14e   :  { %v1077_v39 = vadd.f32 %v1076_v37, %v1075_v35  ;;  %v1078_v41 = vpop.f32.mrb[6].mxu1  ;;  %v1057_v42 = vpop.f32.mrb[7].mxu0 }
 0x14f   :  { %v1079_v43 = vpop.f32.mrb[7].mxu1  ;;  %v727_v44 = vadd.f32 %v1055_v38, %v687_v33 }
 0x151   :  { %v767_v45 = vadd.f32 %v1077_v39, %v727_v44 }
 0x153   :  { %v772_v46 = vmax.f32 %v767_v45, 0.0 }
 0x155   :  { %v773_v47 = vpack.c.bf16 %v772_v46, %v772_v46 }
 0x157   :  { %1107 = vmatmul.mubr.bf16.vlgmr.msra.gmra.mrb[8].mxu0 %v773_v47 }
 0x22a   :  { %v879_v49 = vpop.f32.mrb[8].mxu0 }
 0x22b   :  { %v880_v50 = vadd.f32 %v984_v48, %v879_v49  ;;  %v1108_v51 = vpop.f32.mrb[9].mxu0 }
 0x22c   :  { %v882_v52 = vpop.f32.mrb[10].mxu0 }
 0x22d   :  { %885 = vmax.xlane.f32.xlu0 %v880_v50  ;;  %v1109_v53 = vpop.f32.mrb[11].mxu0 }
 0x2ba   :  { %v886_v54 = vpop.xlane.xlu0 %885 }
 0x2bb   :  { %v887_v55 = vsub.f32 %v880_v50, %v886_v54 }
 0x2bd   :  { %v888_v56 = vmul.f32 1.442695, %v887_v55 }
 0x2bf   :  { %1198 = vpow2.f32 %v888_v56 }
 0x2c9   :  { %v1199_v57 = vpop.eup %1198 }
 0x2ca   :  { %890 = vadd.xlane.f32.xlu0 %v1199_v57 }
 0x357   :  { %v891_v58 = vpop.xlane.xlu0 %890 }
 0x358   :  { %1200 = vrcp.f32 %v891_v58 }
 0x362   :  { %v1201_v59 = vpop.eup %1200 }
 0x363   :  { %v893_v60 = vmul.f32 %v1201_v59, %v1199_v57 }
 0x365   :  { %894 = vst [vmem:[#allocation8] sm:$0xff] %v893_v60 }
 0x366   :  { %1279 = shalt.err (!%p1276_p0)
}
 0x367   :  { %s1280_s10 = scalar_lea.hbm %s1399_s5, 128 }
 0x368   :  { %p1281_p1 = scmp.ne.s32.totalorder %s1399_s5, %s1280_s10  ;;  %p1284_p2 = scmp.lt.u32.totalorder %s1280_s10, %s1399_s5 }
 0x36a   :  { %p1286_p3 = pnand %p1284_p2, %p1281_p1 }
 0x36c   :  { %1289 = shalt.err (!%p1286_p3)
}
 0x36d   :  { %904 = dma.vmem_to_hbm [thread:$0]  %s902_s7, 128, %s1399_s5, [#allocation4]  }
 0x36e   :  { %1294 = dma.done.wait [#allocation4], 128  }
 0x36f   :  { %1295 = vsyncadd [#allocation4], 4294967168 }
 0x370   :  { %908 = vsyncpa [#allocation3], 1 }
 0x371   :  { %909 = vsyncpa [#allocation6], 1 }
 0x372   :  { %910 = vsyncpa [#allocation4], 1 }

</bundles_post_ra>
